<compile_context>
chip_gen: v6e
topology: v6e:2x2x1
jax: 0.10.0
libtpu: 0.0.40
codegen_flags: <defaults>
</compile_context>

<pallas_src>
import jax
import jax.numpy as jnp
from jax import lax
from jax.experimental import pallas as pl
from jax.experimental.pallas import tpu as pltpu


def _linear_argmax_kernel(x_ref, w_ref, b_ref, idx_ref):
    """One row tile: fused linear -> first-index-of-max, lane-dense."""
    # MXU matmul with f32 accumulation: (tn, Fin) @ (Fin, C) -> (tn, C).
    y = jnp.dot(x_ref[...], w_ref[...], preferred_element_type=jnp.float32)
    # Transpose once (XLU slot has slack) so the whole post-matmul chain runs on
    # a dense (C, tn) layout (128 live lanes/vreg) instead of (tn, C) where only
    # C of 128 lanes per vreg are live.
    yt = y.T + b_ref[...]                                  # (C, tn) + (C, 1)
    c = yt.shape[0]
    m = jnp.max(yt, axis=0, keepdims=True)                 # (1, tn) sublane max
    ids = lax.broadcasted_iota(jnp.int32, (c, 1), 0)       # tiny iota, broadcast in where
    # First index achieving the max (matches torch .max(-1) tie-breaking).
    # TODO(synk): an all-NaN row yields the sentinel `c` -> all-zero one-hot row,
    #             whereas torch argmax would return the NaN position.
    idx_ref[...] = jnp.min(jnp.where(yt >= m, ids, c), axis=0, keepdims=True)


def softmax_layer_forward(x, w, b, gamma, beta, running_mean, running_var,
                          eps=1e-5, tile_n=8192, use_kernel=None,
                          compute_dtype=jnp.float32):
    """Eval-mode SoftmaxLayer forward: one_hot(argmax(BN(lin1(x)))).

    x: (N, Fin) f32, w: (Fin, C), b / BN params: (C,). Returns (N, C) one-hot f32.
    """
    N, Fin = x.shape
    C = w.shape[1]

    # Fold BatchNorm1d (inference, running stats) and the Linear bias:
    #   y = ((x @ w + b) - mu) / sqrt(var + eps) * gamma + beta
    #     = x @ (w * scale) + (b * scale + shift)
    scale = (gamma / jnp.sqrt(running_var + eps)).astype(jnp.float32)
    shift = (beta - running_mean * scale).astype(jnp.float32)
    w_fused = w.astype(jnp.float32) * scale[None, :]
    b_fused = b.astype(jnp.float32) * scale + shift

    # argmax(softmax(y)) == argmax(y): softmax is monotone, exp/sum never computed.

    if use_kernel is None:
        use_kernel = N >= 4096           # kernel only pays off at scale
    if N < 128:                          # too small for a legal/useful row tile
        use_kernel = False

    if not use_kernel:
        idx = jnp.argmax(x.astype(jnp.float32) @ w_fused + b_fused, axis=-1)
        return jax.nn.one_hot(idx, C, dtype=jnp.float32)

    # ---- Row-tile sizing. No jnp.pad: the ragged last block reads garbage rows
    #      whose outputs are discarded. Keep >= 2 grid steps so "parallel" can
    #      shard the row grid across v7x's 2 TensorCores; otherwise take the
    #      biggest tile (amortizes the ~0.35 us per-grid-step overhead).
    def _cdiv(a, d):
        return -(-a // d)

    n_tiles = max(2, _cdiv(N, tile_n))
    tn = min(tile_n, _cdiv(_cdiv(N, n_tiles), 128) * 128)   # multiple of 128 lanes
    nt = _cdiv(N, tn)

    x_k = x.astype(compute_dtype)        # bf16 halves HBM traffic if requested
    w_k = w_fused.astype(compute_dtype)
    b_k = b_fused.reshape(C, 1)          # (C, 1): broadcasts over lanes in-kernel

    idx_tiles = pl.pallas_call(
        _linear_argmax_kernel,
        out_shape=jax.ShapeDtypeStruct((nt, 1, tn), jnp.int32),
        grid=(nt,),
        in_specs=[
            pl.BlockSpec((tn, Fin), lambda i: (i, 0)),   # streamed x row tile
            pl.BlockSpec((Fin, C), lambda i: (0, 0)),    # fused weight (resident)
            pl.BlockSpec((C, 1), lambda i: (0, 0)),      # fused bias   (resident)
        ],
        out_specs=pl.BlockSpec((None, 1, tn), lambda i: (i, 0, 0)),  # lane-dense idx row
        compiler_params=pltpu.CompilerParams(
            dimension_semantics=("parallel",)),
    )(x_k, w_k, b_k)

    idx = idx_tiles.reshape(nt * tn)[:N]
    # One-hot scatter (ArgMax.forward's y_hard) done lane-dense by XLA: the kernel
    # ships 4 B/row of indices instead of 4*C B/row of masked one-hot stores.
    return jax.nn.one_hot(idx, C, dtype=jnp.float32)


if __name__ == "__main__":
    key = jax.random.PRNGKey(0)
    # nodes, in_features, out_channels — N deliberately not a tile multiple so the
    # ragged-last-block path is exercised.
    N, Fin, C = 300, 32, 8

    kx, kw, kb, kg, kbeta, km, kv = jax.random.split(key, 7)
    x = jax.random.normal(kx, (N, Fin), dtype=jnp.float32)
    bound = 1.0 / jnp.sqrt(Fin)
    w = jax.random.uniform(kw, (Fin, C), minval=-bound, maxval=bound, dtype=jnp.float32)
    b = jax.random.uniform(kb, (C,), minval=-bound, maxval=bound, dtype=jnp.float32)
    gamma = jax.random.uniform(kg, (C,), minval=0.5, maxval=1.5, dtype=jnp.float32)
    beta = 0.1 * jax.random.normal(kbeta, (C,), dtype=jnp.float32)
    running_mean = 0.1 * jax.random.normal(km, (C,), dtype=jnp.float32)
    running_var = jax.random.uniform(kv, (C,), minval=0.5, maxval=1.5, dtype=jnp.float32)

    # Force the kernel path at demo size (auto heuristic would pick the XLA fallback).
    out = softmax_layer_forward(x, w, b, gamma, beta, running_mean, running_var,
                                use_kernel=True)
    out = jax.block_until_ready(out)

    # Reference: same folded math in plain XLA. Tie-tolerant comparison, because
    # fused vs. unfused rounding can legitimately flip exact near-ties.
    scale = gamma / jnp.sqrt(running_var + 1e-5)
    shift = beta - running_mean * scale
    logits = x @ (w * scale[None, :]) + (b * scale + shift)
    ref_idx = jnp.argmax(logits, axis=-1)
    top2 = jnp.sort(logits, axis=-1)[:, -2:]
    margin = top2[:, 1] - top2[:, 0]
    got_idx = jnp.argmax(out, axis=-1)

    assert out.shape == (N, C) and out.dtype == jnp.float32
    assert bool(jnp.all(jnp.sum(out, axis=-1) == 1.0))
    assert bool(jnp.all((got_idx == ref_idx) | (margin < 1e-4)))

    # Small-N auto fallback (plain XLA) sanity check.
    out_small = softmax_layer_forward(x[:16], w, b, gamma, beta,
                                      running_mean, running_var)
    out_small = jax.block_until_ready(out_small)
    assert out_small.shape == (16, C)

    print("KERNEL_OK")
</pallas_src>

<mosaic_0001>
module attributes {stable_mosaic.version = 11 : i64} {
  func.func @_linear_argmax_kernel(%arg0: i32, %arg1: memref<256x32xf32, #tpu.memory_space<vmem>>, %arg2: memref<32x8xf32, #tpu.memory_space<vmem>>, %arg3: memref<8x1xf32, #tpu.memory_space<vmem>>, %arg4: memref<1x1x256xi32, #tpu.memory_space<vmem>>) attributes {dimension_semantics = [#tpu.dimension_semantics<parallel>], iteration_bounds = array<i64: 2>, scalar_prefetch = 0 : i64, scratch_operands = 0 : i64, tpu.core_type = #tpu.core_type<tc>, window_params = [{transform_indices = @transform_0, window_bounds = array<i64: 256, 32>}, {pipeline_mode = #tpu.pipeline_mode<synchronous>, transform_indices = @transform_1, window_bounds = array<i64: 32, 8>}, {pipeline_mode = #tpu.pipeline_mode<synchronous>, transform_indices = @transform_2, window_bounds = array<i64: 8, 1>}, {transform_indices = @transform_3, window_bounds = array<i64: 1, 1, 256>}]} {
    %c0 = arith.constant 0 : index
    %c0_0 = arith.constant 0 : index
    %0 = vector.load %arg1[%c0, %c0_0] : memref<256x32xf32, #tpu.memory_space<vmem>>, vector<256x32xf32>
    %c0_1 = arith.constant 0 : index
    %c0_2 = arith.constant 0 : index
    %1 = vector.load %arg2[%c0_1, %c0_2] : memref<32x8xf32, #tpu.memory_space<vmem>>, vector<32x8xf32>
    %cst = arith.constant dense<0.000000e+00> : vector<256x8xf32>
    %2 = tpu.matmul %0, %1, %cst {dimension_numbers = #tpu.dot_dimension_numbers<[1], [0], [0], [1], [0, 0, 1, 1], [], []>} : vector<256x32xf32>, vector<32x8xf32>, vector<256x8xf32> -> vector<256x8xf32>
    %3 = tpu.transpose %2, [1, 0] : vector<256x8xf32> -> vector<8x256xf32>
    %c0_3 = arith.constant 0 : index
    %c0_4 = arith.constant 0 : index
    %4 = vector.load %arg3[%c0_3, %c0_4] : memref<8x1xf32, #tpu.memory_space<vmem>>, vector<8x1xf32>
    %5 = vector.broadcast %4 : vector<8x1xf32> to vector<8x256xf32>
    %6 = arith.addf %3, %5 : vector<8x256xf32>
    %cst_5 = arith.constant dense<0xFF800000> : vector<256xf32>
    %7 = vector.multi_reduction <maximumf>, %6, %cst_5 [0] : vector<8x256xf32> to vector<256xf32>
    %8 = vector.shape_cast %7 : vector<256xf32> to vector<1x256xf32>
    %9 = tpu.iota {dimensions = array<i32: 0>} : vector<8x1xi32>
    %10 = vector.broadcast %8 : vector<1x256xf32> to vector<8x256xf32>
    %11 = arith.cmpf oge, %6, %10 : vector<8x256xf32>
    %c8_i32 = arith.constant 8 : i32
    %12 = vector.shape_cast %9 : vector<8x1xi32> to vector<8x1xi32>
    %13 = vector.broadcast %12 : vector<8x1xi32> to vector<8x256xi32>
    %14 = vector.broadcast %c8_i32 : i32 to vector<8x256xi32>
    %15 = arith.select %11, %13, %14 : vector<8x256xi1>, vector<8x256xi32>
    %cst_6 = arith.constant dense<2147483647> : vector<256xi32>
    %16 = vector.multi_reduction <minsi>, %15, %cst_6 [0] : vector<8x256xi32> to vector<256xi32>
    %17 = vector.shape_cast %16 : vector<256xi32> to vector<1x256xi32>
    %c0_7 = arith.constant 0 : index
    %c0_8 = arith.constant 0 : index
    %c0_9 = arith.constant 0 : index
    %18 = vector.load %arg4[%c0_7, %c0_8, %c0_9] : memref<1x1x256xi32, #tpu.memory_space<vmem>>, vector<1x1x256xi32>
    %19 = vector.shape_cast %18 : vector<1x1x256xi32> to vector<1x256xi32>
    %20 = vector.shape_cast %17 : vector<1x256xi32> to vector<1x1x256xi32>
    tpu.vector_store %arg4[%c0_7, %c0_8, %c0_9], %20 {strides = array<i32>} : memref<1x1x256xi32, #tpu.memory_space<vmem>>, vector<1x1x256xi32>,
    return
  }
  func.func @transform_0(%arg0: i32) -> (i32, i32) {
    %c0_i32 = arith.constant 0 : i32
    %c0_i32_0 = arith.constant 0 : i32
    return %arg0, %c0_i32 : i32, i32
  }
  func.func @transform_1(%arg0: i32) -> (i32, i32) {
    %c0_i32 = arith.constant 0 : i32
    %c0_i32_0 = arith.constant 0 : i32
    %c0_i32_1 = arith.constant 0 : i32
    return %c0_i32, %c0_i32_0 : i32, i32
  }
  func.func @transform_2(%arg0: i32) -> (i32, i32) {
    %c0_i32 = arith.constant 0 : i32
    %c0_i32_0 = arith.constant 0 : i32
    %c0_i32_1 = arith.constant 0 : i32
    return %c0_i32, %c0_i32_0 : i32, i32
  }
  func.func @transform_3(%arg0: i32) -> (i32, i32, i32) {
    %c0_i32 = arith.constant 0 : i32
    %c0_i32_0 = arith.constant 0 : i32
    %c0_i32_1 = arith.constant 0 : i32
    return %arg0, %c0_i32, %c0_i32_0 : i32, i32, i32
  }
}

</mosaic_0001>

<bundles_post_ra>
// kernel: tpu_custom_call.1
= control target key start
LH: loop header
LB: loop body
LE: loop exit
PB: predicated region body
PF: predicated region fallthrough
CT: control target
= control target key end

     0   :  { %8 = vsyncpa [#allocation3], 0  ;;  %s1190_s0 = inlined_call_operand.vmem [shape: f32[300,32], index: 0, kind: input, shape index: {}]   ;;  %s1191_s1 = inlined_call_operand.vmem [shape: f32[32,8], index: 1, kind: input, shape index: {}]   ;;  %s1192_s2 = inlined_call_operand.vmem [shape: f32[8,1], index: 2, kind: input, shape index: {}]   ;;  %s1193_s3 = inlined_call_operand.hbm [shape: s32[2,1,256], index: 3, kind: output, shape index: {}]  }
   0x1   :  { %10 = vsyncpa [#allocation3 + $0x1], 0  ;;  %s1023_s12 = smov 0   ;;  %s1025_s13 = smov 0  }
   0x2   :  { %s1027_s14 = smov 0   ;;  %s1029_s15 = smov 0  }
   0x3 LB: > { %s750_s16 = sadd.s32 4294967295, %s998_s15   ;;  %s751_s17 = sadd.s32 4294967294, %s998_s15   ;;  %s998_s15 = sphi %s1029_s15, %s1199_s15   ;;  %s994_s14 = sphi %s1027_s14, %s1198_s14   ;;  %s990_s13 = sphi %s1025_s13, %s1197_s13   ;;  %s986_s12 = sphi %s1023_s12, %s1196_s12  }
   0x4   : > { %s1046_s18 = sadd.s32 1, %s998_s15   ;;  %s91_s19 = sadd.s32 1, %s994_s14 }
   0x5   : > { %s88_s20 = ssub.s32 %s998_s15, %s1046_s18  ;;  %p101_p0 = scmp.ne.s32.totalorder %s994_s14, %s990_s13 }
   0x6   : > { %p89_p1 = scmp.eq.s32.totalorder %s88_s20, 0  ;;  %p102_p2 = scmp.eq.s32.totalorder %s750_s16, 1 }
   0x7   : > { %p107_p3 = scmp.ne.s32.totalorder %s990_s13, %s986_s12  ;;  %p108_p4 = scmp.eq.s32.totalorder %s751_s17, 1 }
   0x8   : > { %s1056_s21 = scalar_select %p89_p1, %s994_s14, %s91_s19  }
   0x9   : > { %p1058_p5 = por %p102_p2, %p101_p0  ;;  %p1062_p6 = por %p108_p4, %p107_p3 }
   0xa   : > { %p754_p7 = scmp.ge.s32.totalorder %s998_s15, 1  ;;  %p149_p8 = scmp.lt.s32.totalorder %s998_s15, 3 }
   0xc   : > { %p150_p9 = pnand %p754_p7, %p149_p8 }
   0xd   : > { %s1074_s28 = sshll.u32 (!%p150_p9), %s750_s16, 5  ;;  %s174_s17 = sand.u32 (!%p150_p9), 1, %s990_s13  }
   0xe   : > { %153 = sbr.rel (%p150_p9) target bundleno = 396 (0x18c), region = 32  ;;  %p182_p10 = scmp.lt.s32.totalorder (!%p150_p9), %s1074_s28, 37 }
   0xf   : > { %s755_s19 = sshll.u32 (!%p150_p9), %s174_s17, 1  ;;  %s690_s27 = scalar_lea.hbm (!%p150_p9), %s1193_s3, %s1074_s28 }
  0x10   : > { %s176_s20 = scalar_lea.vmem (!%p150_p9), [#allocation2], %s755_s19  ;;  %s678_s29 = scalar_lea.sflag (!%p150_p9), [#allocation3], %s174_s17 }
  0x11   : > { %s692_s24 = sshll.u32 (!%p150_p9), %s176_s20, 4  ;;  %s693_s24 = int_to_ptr.vmem [resolvable:$true] %s692_s24 }
  0x12   : > { %s938_s30 = scalar_lea.vmem (!%p150_p9), %s693_s24, 32 }
  0x13   : > { %v226_v0 = vld [vmem:[%s1191_s1 + $0x18] sm:$0xff]  ;;  %v225_v1 = vld [vmem:[%s1191_s1 + $0x10] sm:$0xff]  ;;  %v224_v2 = vld [vmem:[%s1191_s1 + $0x8] sm:$0xff]  ;;  %s183_s4 = scalar_select %p182_p10, %s1074_s28, 37  ;;  %vm227_vm0 = vcmask 261120   ;;  %v1000_v15 = vmov 0  }
  0x14   : > { %832 = vmatprep.subr.mxu0 %v226_v0  ;;  %888 = vmatprep.subr.mxu1 %v226_v0  ;;  %v223_v3 = vld [vmem:[%s1191_s1] sm:$0xff]  ;;  %p939_p11 = scmp.ne.s32.totalorder %s693_s24, %s938_s30 }
  0x15   : > { %833 = vmatpush3.msra.mxu0 %v226_v0  ;;  %892 = vmatpush3.msra.mxu1 %v226_v0  ;;  %s757_s7 = sshll.u32 %s183_s4, 3  ;;  %v613_v10 = vld [vmem:[%s1192_s2] sm:$0xff]  ;;  %s1002_s4 = smov [#allocation2]  }
  0x16   : > { %834 = vmatprep.subr.mxu0 %v225_v1  ;;  %889 = vmatprep.subr.mxu1 %v225_v1  ;;  %s1087_s10 = scalar_lea.vmem %s1190_s0, %s757_s7  ;;  %p940_p12 = pnand %p939_p11, %p1058_p5 }
  0x17   : > { %835 = vmatpush3.msra.mxu0 %v225_v1  ;;  %893 = vmatpush3.msra.mxu1 %v225_v1  ;;  %v191_v4 = vld [vmem:[%s1087_s10] sm:$0xff]  ;;  %v192_v6 = vld [vmem:[%s1087_s10 + $0x8] sm:$0xff]  ;;  %v193_v8 = vld [vmem:[%s1087_s10 + $0x10] sm:$0xff]  ;;  %s942_s5 = sshll.u32 %s1002_s4, 4  ;;  %s943_s5 = int_to_ptr.vmem [resolvable:$false] %s942_s5 }
  0x18   : > { %836 = vmatprep.subr.mxu0 %v224_v2  ;;  %890 = vmatprep.subr.mxu1 %v224_v2  ;;  %v207_v5 = vld [vmem:[%s1087_s10 + $0x80] sm:$0xff]  ;;  %v208_v7 = vld [vmem:[%s1087_s10 + $0x88] sm:$0xff]  ;;  %v209_v9 = vld [vmem:[%s1087_s10 + $0x90] sm:$0xff]  ;;  %p941_p13 = pneg %p940_p12  ;;  %s944_s6 = scalar_lea.vmem %s943_s5, 64 }
  0x19   : > { %837 = vmatpush3.msra.mxu0 %v224_v2  ;;  %894 = vmatpush3.msra.mxu1 %v224_v2  ;;  %v194_v11 = vld [vmem:[%s1087_s10 + $0x18] sm:$0xff]  ;;  %v195_v13 = vld [vmem:[%s1087_s10 + $0x20] sm:$0xff]  ;;  %v196_v16 = vld [vmem:[%s1087_s10 + $0x28] sm:$0xff]  ;;  %p945_p0 = scmp.lt.s32.totalorder %s693_s24, %s943_s5  ;;  %p946_p1 = scmp.lt.s32.totalorder %s944_s6, %s938_s30 }
  0x1a   : > { %838 = vmatprep.subr.mxu0 %v223_v3  ;;  %891 = vmatprep.subr.mxu1 %v223_v3  ;;  %v210_v12 = vld [vmem:[%s1087_s10 + $0x98] sm:$0xff]  ;;  %v211_v14 = vld [vmem:[%s1087_s10 + $0xa0] sm:$0xff]  ;;  %v212_v17 = vld [vmem:[%s1087_s10 + $0xa8] sm:$0xff] }
  0x1b   : > { %839 = vmatpush3.msra.mxu0 %v223_v3  ;;  %895 = vmatpush3.msra.mxu1 %v223_v3  ;;  %v197_v18 = vld [vmem:[%s1087_s10 + $0x30] sm:$0xff]  ;;  %v198_v20 = vld [vmem:[%s1087_s10 + $0x38] sm:$0xff]  ;;  %v199_v22 = vld [vmem:[%s1087_s10 + $0x40] sm:$0xff]  ;;  %p947_p2 = por %p946_p1, %p945_p0 }
  0x1c   : > { %840 = vmatprep.mubr.msk.f32.mxu0 %vm227_vm0, %v191_v4  ;;  %864 = vmatprep.mubr.msk.f32.mxu1 %vm227_vm0, %v207_v5  ;;  %v213_v19 = vld [vmem:[%s1087_s10 + $0xb0] sm:$0xff]  ;;  %v214_v21 = vld [vmem:[%s1087_s10 + $0xb8] sm:$0xff]  ;;  %v215_v23 = vld [vmem:[%s1087_s10 + $0xc0] sm:$0xff] }
  0x1d   : > { %841 = vmatmul.mubr.msk.f32.vlgmr.msra.gmra.mxu0 %vm227_vm0, %v192_v6  ;;  %865 = vmatmul.mubr.msk.f32.vlgmr.msra.gmra.mxu1 %vm227_vm0, %v208_v7  ;;  %v200_v24 = vld [vmem:[%s1087_s10 + $0x48] sm:$0xff]  ;;  %v201_v26 = vld [vmem:[%s1087_s10 + $0x50] sm:$0xff]  ;;  %v202_v28 = vld [vmem:[%s1087_s10 + $0x58] sm:$0xff]  ;;  %p948_p3 = pnand %p947_p2, %p941_p13 }
  0x1e   : > { %843 = vmatprep.mubr.msk.f32.mxu0 %vm227_vm0, %v193_v8  ;;  %867 = vmatprep.mubr.msk.f32.mxu1 %vm227_vm0, %v209_v9  ;;  %v216_v25 = vld [vmem:[%s1087_s10 + $0xc8] sm:$0xff]  ;;  %v217_v27 = vld [vmem:[%s1087_s10 + $0xd0] sm:$0xff]  ;;  %v218_v29 = vld [vmem:[%s1087_s10 + $0xd8] sm:$0xff] }
  0x1f   : > { %937 = vset.pattern.permute.xlu0 %v1000_v15  ;;  %v203_v30 = vld [vmem:[%s1087_s10 + $0x60] sm:$0xff]  ;;  %v204_v32 = vld [vmem:[%s1087_s10 + $0x68] sm:$0xff]  ;;  %v205_v34 = vld [vmem:[%s1087_s10 + $0x70] sm:$0xff] }
  0x20   : > { %616 = vperm.xlu0 %937, %v613_v10   ;;  %v219_v31 = vld [vmem:[%s1087_s10 + $0xe0] sm:$0xff]  ;;  %v220_v33 = vld [vmem:[%s1087_s10 + $0xe8] sm:$0xff]  ;;  %v221_v35 = vld [vmem:[%s1087_s10 + $0xf0] sm:$0xff] }
  0x21   : > { %844 = vmatmul.mubr.msk.f32.gmra.mxu0 %vm227_vm0, %v194_v11  ;;  %868 = vmatmul.mubr.msk.f32.gmra.mxu1 %vm227_vm0, %v210_v12  ;;  %v206_v36 = vld [vmem:[%s1087_s10 + $0x78] sm:$0xff] }
  0x22   : > { %846 = vmatprep.mubr.msk.f32.mxu0 %vm227_vm0, %v195_v13  ;;  %870 = vmatprep.mubr.msk.f32.mxu1 %vm227_vm0, %v211_v14  ;;  %v222_v37 = vld [vmem:[%s1087_s10 + $0xf8] sm:$0xff] }
  0x25   : > { %847 = vmatmul.mubr.msk.f32.gmra.mxu0 %vm227_vm0, %v196_v16  ;;  %871 = vmatmul.mubr.msk.f32.gmra.mxu1 %vm227_vm0, %v212_v17  ;;  %v633_v17 = vlaneseq }
  0x26   : > { %849 = vmatprep.mubr.msk.f32.mxu0 %vm227_vm0, %v197_v18  ;;  %873 = vmatprep.mubr.msk.f32.mxu1 %vm227_vm0, %v213_v19 }
  0x27   : > { %vm674_vm9 = vcmp.lt.s32.totalorder %v633_v17, 256 }
  0x29   : > { %850 = vmatmul.mubr.msk.f32.gmra.mxu0 %vm227_vm0, %v198_v20  ;;  %874 = vmatmul.mubr.msk.f32.gmra.mxu1 %vm227_vm0, %v214_v21 }
  0x2a   : > { %852 = vmatprep.mubr.msk.f32.mxu0 %vm227_vm0, %v199_v22  ;;  %876 = vmatprep.mubr.msk.f32.mxu1 %vm227_vm0, %v215_v23  ;;  %v634_v22 = vshrl.u32 %v633_v17, 7 }
  0x2d   : > { %853 = vmatmul.mubr.msk.f32.gmra.mxu0 %vm227_vm0, %v200_v24  ;;  %877 = vmatmul.mubr.msk.f32.gmra.mxu1 %vm227_vm0, %v216_v25 }
  0x2e   : > { %855 = vmatprep.mubr.msk.f32.mxu0 %vm227_vm0, %v201_v26  ;;  %879 = vmatprep.mubr.msk.f32.mxu1 %vm227_vm0, %v217_v27 }
  0x31   : > { %856 = vmatmul.mubr.msk.f32.gmra.mxu0 %vm227_vm0, %v202_v28  ;;  %880 = vmatmul.mubr.msk.f32.gmra.mxu1 %vm227_vm0, %v218_v29  ;;  %v1001_v29 = vmov 1966171168  }
  0x32   : > { %858 = vmatprep.mubr.msk.f32.mxu0 %vm227_vm0, %v203_v30  ;;  %882 = vmatprep.mubr.msk.f32.mxu1 %vm227_vm0, %v219_v31  ;;  %v659_v30 = vunpack.c.l.s4 %v1001_v29 }
  0x35   : > { %859 = vmatmul.mubr.msk.f32.gmra.mxu0 %vm227_vm0, %v204_v32  ;;  %883 = vmatmul.mubr.msk.f32.gmra.mxu1 %vm227_vm0, %v220_v33 }
  0x36   : > { %861 = vmatprep.mubr.msk.f32.mxu0 %vm227_vm0, %v205_v34  ;;  %885 = vmatprep.mubr.msk.f32.mxu1 %vm227_vm0, %v221_v35  ;;  %v660_v35 = vunpack.c.0.s8 %v659_v30 }
  0x39   : > { %862 = vmatmul.mubr.msk.f32.gmra.mxu0 %vm227_vm0, %v206_v36  ;;  %886 = vmatmul.mubr.msk.f32.gmra.mxu1 %vm227_vm0, %v222_v37 }
  0x9b   : > { %v617_v6 = vpop.permute.xlu0 %616 }
  0xdd   : > { %v842_v38 = vpop.f32.mrf.mxu0  ;;  %v866_v39 = vpop.f32.mrf.mxu1 }
  0xdf   : > { %v390_v40 = vpop.f32.mrf.mxu0  ;;  %v470_v41 = vpop.f32.mrf.mxu1 }
  0xe0   : > { %581 = vxpose.xlu1.b32.start [1/16] (narrow) %v470_v41, 8  ;;  %549 = vxpose.xlu0.b32.start [1/16] (narrow) %v390_v40, 8  ;;  %v663_v40 = vsub.s32 %v660_v35, %v634_v22 }
  0xe1   : > { %v845_v42 = vpop.f32.mrf.mxu0  ;;  %v869_v43 = vpop.f32.mrf.mxu1 }
  0xe3   : > { %v400_v44 = vpop.f32.mrf.mxu0  ;;  %v480_v45 = vpop.f32.mrf.mxu1 }
  0xe4   : > { %582 = vxpose.xlu1.b32.cont [2/16] (narrow) %v866_v39, 8  ;;  %550 = vxpose.xlu0.b32.cont [2/16] (narrow) %v842_v38, 8 }
  0xe5   : > { %v848_v46 = vpop.f32.mrf.mxu0  ;;  %v872_v47 = vpop.f32.mrf.mxu1 }
  0xe7   : > { %v410_v48 = vpop.f32.mrf.mxu0  ;;  %v490_v49 = vpop.f32.mrf.mxu1 }
  0xe8   : > { %583 = vxpose.xlu1.b32.cont [3/16] (narrow) %v480_v45, 8  ;;  %551 = vxpose.xlu0.b32.cont [3/16] (narrow) %v400_v44, 8 }
  0xe9   : > { %v851_v50 = vpop.f32.mrf.mxu0  ;;  %v875_v51 = vpop.f32.mrf.mxu1 }
  0xeb   : > { %v420_v52 = vpop.f32.mrf.mxu0  ;;  %v500_v53 = vpop.f32.mrf.mxu1 }
  0xec   : > { %584 = vxpose.xlu1.b32.cont [4/16] (narrow) %v869_v43, 8  ;;  %552 = vxpose.xlu0.b32.cont [4/16] (narrow) %v845_v42, 8 }
  0xed   : > { %v854_v54 = vpop.f32.mrf.mxu0  ;;  %v878_v55 = vpop.f32.mrf.mxu1 }
  0xef   : > { %v430_v56 = vpop.f32.mrf.mxu0  ;;  %v510_v57 = vpop.f32.mrf.mxu1 }
  0xf0   : > { %585 = vxpose.xlu1.b32.cont [5/16] (narrow) %v490_v49, 8  ;;  %553 = vxpose.xlu0.b32.cont [5/16] (narrow) %v410_v48, 8 }
  0xf1   : > { %v857_v58 = vpop.f32.mrf.mxu0  ;;  %v881_v59 = vpop.f32.mrf.mxu1 }
  0xf3   : > { %v440_v60 = vpop.f32.mrf.mxu0  ;;  %v520_v61 = vpop.f32.mrf.mxu1 }
  0xf4   : > { %586 = vxpose.xlu1.b32.cont [6/16] (narrow) %v872_v47, 8  ;;  %554 = vxpose.xlu0.b32.cont [6/16] (narrow) %v848_v46, 8 }
  0xf5   : > { %v860_v62 = vpop.f32.mrf.mxu0  ;;  %v884_v63 = vpop.f32.mrf.mxu1 }
  0xf7   : > { %v450_v0 = vpop.f32.mrf.mxu0  ;;  %v530_v1 = vpop.f32.mrf.mxu1 }
  0xf8   : > { %587 = vxpose.xlu1.b32.cont [7/16] (narrow) %v500_v53, 8  ;;  %555 = vxpose.xlu0.b32.cont [7/16] (narrow) %v420_v52, 8 }
  0xf9   : > { %v863_v2 = vpop.f32.mrf.mxu0  ;;  %v887_v3 = vpop.f32.mrf.mxu1 }
  0xfb   : > { %v460_v4 = vpop.f32.mrf.mxu0  ;;  %v540_v5 = vpop.f32.mrf.mxu1 }
  0xfc   : > { %588 = vxpose.xlu1.b32.cont [8/16] (narrow) %v875_v51, 8  ;;  %556 = vxpose.xlu0.b32.cont [8/16] (narrow) %v851_v50, 8 }
 0x100   : > { %589 = vxpose.xlu1.b32.cont [9/16] (narrow) %v510_v57, 8  ;;  %557 = vxpose.xlu0.b32.cont [9/16] (narrow) %v430_v56, 8 }
 0x104   : > { %590 = vxpose.xlu1.b32.cont [10/16] (narrow) %v878_v55, 8  ;;  %558 = vxpose.xlu0.b32.cont [10/16] (narrow) %v854_v54, 8 }
 0x108   : > { %591 = vxpose.xlu1.b32.cont [11/16] (narrow) %v520_v61, 8  ;;  %559 = vxpose.xlu0.b32.cont [11/16] (narrow) %v440_v60, 8 }
 0x10c   : > { %592 = vxpose.xlu1.b32.cont [12/16] (narrow) %v881_v59, 8  ;;  %560 = vxpose.xlu0.b32.cont [12/16] (narrow) %v857_v58, 8 }
 0x110   : > { %593 = vxpose.xlu1.b32.cont [13/16] (narrow) %v530_v1, 8  ;;  %561 = vxpose.xlu0.b32.cont [13/16] (narrow) %v450_v0, 8 }
 0x114   : > { %594 = vxpose.xlu1.b32.cont [14/16] (narrow) %v884_v63, 8  ;;  %562 = vxpose.xlu0.b32.cont [14/16] (narrow) %v860_v62, 8 }
 0x118   : > { %595 = vxpose.xlu1.b32.cont [15/16] (narrow) %v540_v5, 8  ;;  %563 = vxpose.xlu0.b32.cont [15/16] (narrow) %v460_v4, 8 }
 0x11c   : > { %596 = vxpose.xlu1.b32.end [16/16] (narrow) %v887_v3, 8  ;;  %564 = vxpose.xlu0.b32.end [16/16] (narrow) %v863_v2, 8 }
 0x15c   : > { %v597_v7 = vpop.trf.xlu1  ;;  %v565_v8 = vpop.trf.xlu0 }
 0x15d   : > { %v620_v9 = vadd.f32 %v617_v6, %v597_v7  ;;  %v619_v10 = vadd.f32 %v617_v6, %v565_v8 }
 0x15f   : > { %v627_v11 = vrot.slane %v620_v9, 4  ;;  %v621_v12 = vrot.slane %v619_v10, 4 }
 0x161   : > { %v628_v13 = vmax.f32 %v620_v9, %v627_v11  ;;  %v622_v14 = vmax.f32 %v619_v10, %v621_v12 }
 0x163   : > { %v629_v15 = vrot.slane %v628_v13, 2  ;;  %v623_v16 = vrot.slane %v622_v14, 2 }
 0x165   : > { %v630_v18 = vmax.f32 %v628_v13, %v629_v15  ;;  %v624_v19 = vmax.f32 %v622_v14, %v623_v16 }
 0x167   : > { %v631_v20 = vrot.slane %v630_v18, 1  ;;  %v625_v21 = vrot.slane %v624_v19, 1 }
 0x169   : > { %v632_v23 = vmax.f32 %v630_v18, %v631_v20  ;;  %v626_v24 = vmax.f32 %v624_v19, %v625_v21 }
 0x16b   : > { %vm636_vm1 = vcmp.ge.f32.partialorder %v620_v9, %v632_v23  ;;  %vm635_vm2 = vcmp.ge.f32.partialorder %v619_v10, %v626_v24 }
 0x16c   : > { %v638_v25 = vsel %vm636_vm1, %v634_v22, 8  ;;  %v637_v26 = vsel %vm635_vm2, %v634_v22, 8 }
 0x16d   : > { %v648_v27 = vrot.slane %v638_v25, 4  ;;  %v639_v28 = vrot.slane %v637_v26, 4 }
 0x16f   : > { %vm649_vm3 = vcmp.lt.s32.totalorder %v638_v25, %v648_v27  ;;  %vm640_vm4 = vcmp.lt.s32.totalorder %v637_v26, %v639_v28 }
 0x170   : > { %v650_v31 = vsel %vm649_vm3, %v638_v25, %v648_v27  ;;  %v641_v32 = vsel %vm640_vm4, %v637_v26, %v639_v28 }
 0x171   : > { %v651_v33 = vrot.slane %v650_v31, 2  ;;  %v642_v34 = vrot.slane %v641_v32, 2 }
 0x173   : > { %vm652_vm5 = vcmp.lt.s32.totalorder %v650_v31, %v651_v33  ;;  %vm643_vm6 = vcmp.lt.s32.totalorder %v641_v32, %v642_v34 }
 0x174   : > { %v653_v36 = vsel %vm652_vm5, %v650_v31, %v651_v33  ;;  %v644_v37 = vsel %vm643_vm6, %v641_v32, %v642_v34 }
 0x175   : > { %v654_v38 = vrot.slane %v653_v36, 1  ;;  %v645_v39 = vrot.slane %v644_v37, 1 }
 0x177   : > { %vm655_vm7 = vcmp.lt.s32.totalorder %v653_v36, %v654_v38  ;;  %vm646_vm8 = vcmp.lt.s32.totalorder %v644_v37, %v645_v39 }
 0x178   : > { %v656_v41 = vsel %vm655_vm7, %v653_v36, %v654_v38  ;;  %v647_v42 = vsel %vm646_vm8, %v644_v37, %v645_v39 }
 0x179   : > { %v657_v43 = vcombine.low %v647_v42, %v656_v41 }
 0x17b   : > { %v664_v44 = vrot.slane %v657_v43, %v663_v40 }
 0x17d   : > { %v671_v45 = vrot.slane %v664_v44, %v663_v40 }
 0x17f   : > { %676 = vst.msk [vmem:[%s176_s20] sm:$0x3] %vm674_vm9, %v671_v45 }
 0x180   : > { %951 = shalt.err (!%p948_p3)
}
 0x181   : > { %s952_s7 = scalar_lea.hbm %s690_s27, 32  ;;  %s956_s9 = scalar_lea.hbm %s1193_s3, 64 }
 0x182   : > { %p953_p4 = scmp.ne.s32.totalorder %s690_s27, %s952_s7  ;;  %p957_p9 = scmp.lt.s32.totalorder %s690_s27, %s1193_s3 }
 0x183   : > { %p958_p10 = scmp.lt.s32.totalorder %s956_s9, %s952_s7 }
 0x184   : > { %p954_p7 = pnand %p953_p4, %p1058_p5 }
 0x185   : > { %p959_p11 = por %p958_p10, %p957_p9 }
 0x186   : > { %p955_p8 = pneg %p954_p7 }
 0x188   : > { %p960_p12 = pnand %p959_p11, %p955_p8 }
 0x18a   : > { %963 = shalt.err (!%p960_p12)
}
 0x18b   : > { %896 = dma.vmem_to_hbm [thread:$0]  (%p1058_p5), %s693_s24, 32, %s690_s27, %s678_s29  }
 0x18c PF: > { %p902_p13 = scmp.ge.s32.totalorder %s998_s15, 2  ;;  %s704_s16 = sand.u32 1, %s986_s12  }
 0x18d   : > { %s705_s17 = scalar_lea.sflag [#allocation3], %s704_s16 }
 0x18e   : > { %p899_p0 = pnand %p902_p13, %p1062_p6 }
 0x190   : > { %p900_p1 = pneg %p899_p0 }
 0x192   : > { %981 = dma.done.wait (%p900_p1), %s705_s17, 32  }
 0x193   : > { %983 = vsyncadd (%p900_p1), %s705_s17, 4294967264  ;;  %p13_p2 = scmp.ge.s32.totalorder %s1046_s18, 4   ;;  %s1196_s12 = smov %s990_s13 }
 0x194   : > { %s1197_s13 = smov %s994_s14  ;;  %s1198_s14 = smov %s1056_s21 }
 0x195   : > { %s1199_s15 = smov %s1046_s18  ;;  %15 = sbr.rel (!%p13_p2) target bundleno = 3 (0x3), region = 67 }
 0x19a   :  { %710 = vsyncpa [#allocation3], 1 }
 0x19b   :  { %712 = vsyncpa [#allocation3 + $0x1], 1 }

</bundles_post_ra>
